<compile_context>
chip_gen: v7x
topology: tpu7x:2x2x1
jax: 0.10.0
libtpu: 0.0.40
codegen_flags: <defaults>
</compile_context>

<pallas_src>
from functools import lru_cache, partial

import jax
import jax.numpy as jnp
from jax.experimental import pallas as pl
from jax.experimental.pallas import tpu as pltpu

_LANE = 128
_MAX_LANE_WIDTH = 32768  # widest lane-dense slab we will form (elements)


def _relux_kernel(x_ref, o_ref, *, thre):
    x = x_ref[...]
    zero = jnp.zeros((), dtype=x.dtype)
    hi = jnp.asarray(thre, dtype=x.dtype)
    o_ref[...] = jnp.minimum(jnp.maximum(x, zero), hi)


@lru_cache(maxsize=None)
def _select_tuning():
    """(target_block_bytes, vmem_limit_bytes or None) per TPU generation."""
    try:
        vmem = int(pltpu.get_tpu_info().vmem_capacity_bytes)
    except Exception:
        # Unknown hardware: 2 MiB blocks fit every generation's scoped default.
        return 2 * 1024 * 1024, None
    if vmem <= 64 * 1024 * 1024:
        # v7x-class: 64 MiB VMEM per TC, ~3.2 TB/s HBM. 6 MiB blocks amortize
        # the ~0.35 us/step overhead; 2(in)+2(out) double-buffers = 24 MiB,
        # comfortably under a 44 MiB scoped limit (default scoped is 32 MiB).
        return 6 * 1024 * 1024, 44 * 1024 * 1024
    # v5e/v6e-class: 128 MiB physical VMEM (scoped default 16/32 MiB).
    # 4 MiB blocks -> 16 MiB of double buffers; raise the scoped limit to 64 MiB.
    return 4 * 1024 * 1024, 64 * 1024 * 1024


def _pick_block_rows(rows, row_bytes, packing, target_block_bytes):
    """Rows per block: multiple of `packing`, ~target_block_bytes, and (when
    there is more than one packed row of work) small enough that the grid has
    >= 2 programs so both v7x TensorCores stream; prefer an even count."""
    if rows <= packing:
        return rows  # single full-extent block (legal: equals the array dim)
    target = max(packing, (target_block_bytes // row_bytes) // packing * packing)
    half = max(packing, ((rows + 1) // 2) // packing * packing)  # always < rows
    tr = min(target, half)
    for cand in (tr, tr - packing, tr - 2 * packing):
        if cand < packing:
            break
        if pl.cdiv(rows, cand) % 2 == 0:  # even program count -> balanced TCs
            return cand
    return tr


def _relux_flat(x_flat, thre, donate):
    """Clamp a 1-D array whose size is a multiple of 128 via Pallas."""
    n = x_flat.size
    dtype = x_flat.dtype
    itemsize = jnp.dtype(dtype).itemsize
    # Sublane packing multiple: 8 for 32-bit, 16 for 16-bit, 32 for 8-bit dtypes.
    packing = max(8, 32 // max(1, itemsize))
    target_block_bytes, vmem_limit = _select_tuning()

    # Widest lane dimension W (multiple of 128, <= _MAX_LANE_WIDTH) dividing n:
    # wide unmasked stores and long DMA descriptors.
    m = n // _LANE
    max_mult = min(m, _MAX_LANE_WIDTH // _LANE)
    w_mult = next(d for d in range(max_mult, 0, -1) if m % d == 0)
    W = w_mult * _LANE
    rows = n // W
    # Free reshape for standard row-major layouts. NOTE: if the producer hands
    # over a non-row-major layout this becomes a relayout copy — check the HLO
    # at the call site (and prefer fusing the clamp into the producer anyway).
    x2d = x_flat.reshape(rows, W)

    tr = _pick_block_rows(rows, W * itemsize, packing, target_block_bytes)
    grid = (pl.cdiv(rows, tr),)  # ragged last block handled by Pallas

    cp_kwargs = dict(dimension_semantics=("parallel",))
    if vmem_limit is not None:
        cp_kwargs["vmem_limit_bytes"] = int(vmem_limit)

    extra = {}
    if donate:
        # Clamp in place when the caller donates x: no separate output buffer.
        extra["input_output_aliases"] = {0: 0}

    out2d = pl.pallas_call(
        partial(_relux_kernel, thre=thre),
        out_shape=jax.ShapeDtypeStruct((rows, W), dtype),
        grid_spec=pltpu.PrefetchScalarGridSpec(
            num_scalar_prefetch=0,
            grid=grid,
            in_specs=[pl.BlockSpec((tr, W), lambda i: (i, 0))],
            out_specs=pl.BlockSpec((tr, W), lambda i: (i, 0)),
        ),
        compiler_params=pltpu.CompilerParams(**cp_kwargs),
        cost_estimate=pl.CostEstimate(
            flops=2 * n, transcendentals=0, bytes_accessed=2 * n * itemsize),
        **extra,
    )(x2d)
    return out2d.reshape(-1)


def relux(x, thre=4, *, donate=False):
    """Elementwise clamp(x, 0, thre) — ReLUX. Accepts any shape (e.g. NCHW).

    Set donate=True only when the caller donates x's buffer (e.g. jit
    donate_argnums); otherwise XLA inserts a defensive copy of the input.
    """
    orig_shape = x.shape
    dtype = x.dtype
    n = x.size
    if n == 0:
        return x

    rem = n % _LANE
    x_flat = x.reshape(-1)
    if rem == 0:
        # Hot path: conv-style activation counts are lane-aligned -> pure Pallas.
        return _relux_flat(x_flat, thre, donate).reshape(orig_shape)

    # Cold path (ragged size): Pallas covers the 128-aligned prefix, plain jnp
    # clamps the <128-element tail. No O(n) pad / strip materialization.
    zero = jnp.zeros((), dtype=dtype)
    hi = jnp.asarray(thre, dtype=dtype)
    n_main = n - rem
    tail = jnp.minimum(jnp.maximum(x_flat[n_main:], zero), hi)
    if n_main == 0:
        return tail.reshape(orig_shape)
    head = _relux_flat(x_flat[:n_main], thre, donate)
    return jnp.concatenate([head, tail]).reshape(orig_shape)


class ReLUX:
    """Drop-in for the PyTorch module: ReLUX(thre)(x) == clamp(x, 0, thre)."""

    def __init__(self, thre=4):
        self.thre = thre

    def __call__(self, x):
        return relux(x, self.thre)


if __name__ == "__main__":
    key = jax.random.PRNGKey(0)
    thre = 4
    mod = ReLUX(thre=thre)

    # NCHW, like the PyTorch module typically sees: batch=2, C=4, H=W=16.
    x = jax.random.normal(key, (2, 4, 16, 16), dtype=jnp.float32) * 5.0
    y = jax.block_until_ready(mod(x))
    y_ref = jnp.clip(x, 0.0, float(thre))
    assert y.shape == x.shape and y.dtype == x.dtype
    assert jnp.allclose(y, y_ref, atol=0, rtol=0)

    # Ragged (non-multiple-of-128) element count exercises the prefix+tail path.
    x_r = jax.random.normal(jax.random.PRNGKey(1), (2, 4, 17, 17),
                            dtype=jnp.float32) * 5.0
    y_r = jax.block_until_ready(relux(x_r, thre=thre))
    assert jnp.allclose(y_r, jnp.clip(x_r, 0.0, float(thre)), atol=0, rtol=0)

    # Donated-buffer (input/output aliasing) path.
    y_d = jax.block_until_ready(relux(x, thre=thre, donate=True))
    assert jnp.allclose(y_d, y_ref, atol=0, rtol=0)

    print("KERNEL_OK")
</pallas_src>

<mosaic_0001>
module attributes {stable_mosaic.version = 11 : i64} {
  func.func @_relux_kernel(%arg0: i32, %arg1: memref<1x2048xf32, #tpu.memory_space<vmem>>, %arg2: memref<1x2048xf32, #tpu.memory_space<vmem>>) attributes {dimension_semantics = [#tpu.dimension_semantics<parallel>], iteration_bounds = array<i64: 1>, scalar_prefetch = 0 : i64, scratch_operands = 0 : i64, tpu.core_type = #tpu.core_type<tc>, window_params = [{transform_indices = @transform_0, window_bounds = array<i64: 1, 2048>}, {transform_indices = @transform_1, window_bounds = array<i64: 1, 2048>}]} {
    %c0 = arith.constant 0 : index
    %c0_0 = arith.constant 0 : index
    %0 = vector.load %arg1[%c0, %c0_0] : memref<1x2048xf32, #tpu.memory_space<vmem>>, vector<1x2048xf32>
    %cst = arith.constant 0.000000e+00 : f32
    %1 = vector.broadcast %cst : f32 to vector<1x2048xf32>
    %2 = arith.maximumf %0, %1 : vector<1x2048xf32>
    %cst_1 = arith.constant 4.000000e+00 : f32
    %3 = vector.broadcast %cst_1 : f32 to vector<1x2048xf32>
    %4 = arith.minimumf %2, %3 : vector<1x2048xf32>
    %c0_2 = arith.constant 0 : index
    %c0_3 = arith.constant 0 : index
    %5 = vector.load %arg2[%c0_2, %c0_3] : memref<1x2048xf32, #tpu.memory_space<vmem>>, vector<1x2048xf32>
    tpu.vector_store %arg2[%c0_2, %c0_3], %4 {strides = array<i32>} : memref<1x2048xf32, #tpu.memory_space<vmem>>, vector<1x2048xf32>,
    return
  }
  func.func @transform_0(%arg0: i32) -> (i32, i32) {
    %c0_i32 = arith.constant 0 : i32
    %c0_i32_0 = arith.constant 0 : i32
    return %arg0, %c0_i32 : i32, i32
  }
  func.func @transform_1(%arg0: i32) -> (i32, i32) {
    %c0_i32 = arith.constant 0 : i32
    %c0_i32_0 = arith.constant 0 : i32
    return %arg0, %c0_i32 : i32, i32
  }
}

</mosaic_0001>

<bundles_post_ra>
// kernel: tpu_custom_call.1
= control target key start
LH: loop header
LB: loop body
LE: loop exit
PB: predicated region body
PF: predicated region fallthrough
CT: control target
= control target key end

     0   :  { %6 = vsyncpa [#allocation3], 0  ;;  %s130_s0 = inlined_call_operand.hbm [shape: f32[1,2048], index: 0, kind: input, shape index: {}]   ;;  %s131_s1 = inlined_call_operand.hbm [shape: f32[1,2048], index: 1, kind: output, shape index: {}]  }
   0x1   :  { %7 = vsyncpa [#allocation4], 0  ;;  %s94_s6 = smov [#allocation2]   ;;  %s46_s10 = scalar_lea.hbm %s130_s0, 256 }
   0x2   :  { %s14_s7 = sshll.u32 %s94_s6, 4  ;;  %p47_p0 = scmp.ne.s32.totalorder %s130_s0, %s46_s10  ;;  %s15_s7 = int_to_ptr.vmem [resolvable:$true] %s14_s7 }
   0x3   :  { %p50_p1 = scmp.lt.u32.totalorder %s46_s10, %s130_s0 }
   0x5   :  { %p52_p2 = pnand %p50_p1, %p47_p0 }
   0x7   :  { %55 = shalt.err (!%p52_p2)
}
   0x8   :  { %s56_s15 = scalar_lea.vmem %s15_s7, 256  ;;  %p61_p4 = scmp.lt.s32.totalorder %s15_s7, %s15_s7 }
   0x9   :  { %p57_p3 = scmp.ne.s32.totalorder %s15_s7, %s56_s15  ;;  %p62_p5 = scmp.lt.s32.totalorder %s56_s15, %s56_s15 }
   0xb   :  { %p63_p6 = por %p62_p5, %p61_p4 }
   0xd   :  { %p64_p7 = pnand %p63_p6, %p57_p3 }
   0xf   :  { %67 = shalt.err (!%p64_p7)
}
  0x10   :  { %17 = dma.hbm_to_vmem [thread:$0]  %s130_s0, 256, %s15_s7, [#allocation3]  }
  0x11   :  { %90 = dma.done.wait [#allocation3], 256  }
  0x12   :  { %91 = vsyncadd [#allocation3], 4294967040  ;;  %v21_v0 = vld [vmem:[#allocation2] sm:$0xff]  ;;  %v22_v1 = vld [vmem:[#allocation2 + $0x8] sm:$0xff]  ;;  %s95_s18 = smov [#allocation5]  }
  0x13   :  { %s35_s19 = sshll.u32 %s95_s18, 4  ;;  %v23_v2 = vmax.f32 %v21_v0, 0.0  ;;  %v24_v3 = vmax.f32 %v22_v1, 0.0  ;;  %s36_s19 = int_to_ptr.vmem [resolvable:$true] %s35_s19 }
  0x14   :  { %s68_s20 = scalar_lea.vmem %s36_s19, 256  ;;  %p73_p9 = scmp.lt.s32.totalorder %s36_s19, %s36_s19 }
  0x15   :  { %v25_v4 = vmin.f32 %v23_v2, 4.0  ;;  %v26_v5 = vmin.f32 %v24_v3, 4.0  ;;  %p69_p8 = scmp.ne.s32.totalorder %s36_s19, %s68_s20  ;;  %p74_p10 = scmp.lt.s32.totalorder %s68_s20, %s68_s20 }
  0x17   :  { %27 = vst [vmem:[#allocation5] sm:$0xff] %v25_v4  ;;  %28 = vst [vmem:[#allocation5 + $0x8] sm:$0xff] %v26_v5  ;;  %p75_p11 = por %p74_p10, %p73_p9 }
  0x19   :  { %p76_p12 = pnand %p75_p11, %p69_p8 }
  0x1b   :  { %79 = shalt.err (!%p76_p12)
}
  0x1c   :  { %s80_s22 = scalar_lea.hbm %s131_s1, 256 }
  0x1d   :  { %p81_p13 = scmp.ne.s32.totalorder %s131_s1, %s80_s22  ;;  %p84_p0 = scmp.lt.u32.totalorder %s80_s22, %s131_s1 }
  0x1f   :  { %p86_p1 = pnand %p84_p0, %p81_p13 }
  0x21   :  { %89 = shalt.err (!%p86_p1)
}
  0x22   :  { %38 = dma.vmem_to_hbm [thread:$0]  %s36_s19, 256, %s131_s1, [#allocation4]  }
  0x23   :  { %92 = dma.done.wait [#allocation4], 256  }
  0x24   :  { %93 = vsyncadd [#allocation4], 4294967040 }
  0x25   :  { %42 = vsyncpa [#allocation3], 1 }
  0x26   :  { %43 = vsyncpa [#allocation4], 1 }

</bundles_post_ra>
